<compile_context>
chip_gen: v7x
topology: tpu7x:2x2x1
jax: 0.10.0
libtpu: 0.0.40
codegen_flags: <defaults>
</compile_context>

<pallas_src>
import math

import jax
import jax.numpy as jnp
from jax.experimental import pallas as pl
from jax.experimental.pallas import tpu as pltpu


def _build_pe(d_model: int, max_len: int) -> jnp.ndarray:
    """Deterministic sinusoidal positional-encoding table (max_len, d_model), f32."""
    position = jnp.arange(max_len, dtype=jnp.float32)[:, None]          # (L, 1)
    div_term = jnp.exp(
        jnp.arange(0, d_model, 2, dtype=jnp.float32)
        * (-math.log(10000.0) / d_model)
    )                                                                    # (D/2,)
    angles = position * div_term                                         # (L, D/2)
    pe = jnp.zeros((max_len, d_model), dtype=jnp.float32)
    pe = pe.at[:, 0::2].set(jnp.sin(angles))
    pe = pe.at[:, 1::2].set(jnp.cos(angles))
    return pe


# ----------------------------------------------------------------------------
# Kernels
# ----------------------------------------------------------------------------

def _pe_add_tile_kernel(x_ref, pe_ref, o_ref):
    # x_ref / o_ref: (ts, D) in x.dtype (batch dim squeezed); pe_ref: (ts, D) f32.
    # Add promotes to f32, store casts back to the activation dtype.
    o_ref[...] = (x_ref[...] + pe_ref[...]).astype(o_ref.dtype)


def _pe_add_full_kernel(x_ref, pe_ref, o_ref):
    # Fast path: everything resident in VMEM in one step.
    # x_ref/o_ref: (B, S, D); pe_ref: (S, D) f32.
    o_ref[...] = (x_ref[...] + pe_ref[...][None, :, :]).astype(o_ref.dtype)


# ----------------------------------------------------------------------------
# Tiling heuristics
# ----------------------------------------------------------------------------

_FAST_PATH_BYTES = 512 * 1024            # below this, one full-block step wins
_VMEM_BUDGET = 24 * 1024 * 1024          # leave headroom under the 32 MiB limit
_VMEM_LIMIT = 32 * 1024 * 1024           # <= physical VMEM on v5e/v6e/v7x


def _sublane_pack(itemsize: int) -> int:
    # f32 -> 8, bf16 -> 16, int8/fp8 -> 32 rows per sublane group.
    return max(8, 32 // max(itemsize, 1))


def _pick_seq_tile(S: int, D: int, itemsize: int, sub: int) -> int:
    """Sequence-tile size: multiple of `sub`, VMEM-budgeted, capped at 1024."""
    # Double-buffered streams per seq row: x-in + x-out (x dtype) + pe (f32).
    bytes_per_row = D * 2 * (2 * itemsize + 4)
    max_rows = max(sub, (_VMEM_BUDGET // bytes_per_row) // sub * sub)
    s_rounded = ((S + sub - 1) // sub) * sub       # never below the sublane pack
    ts = min(1024, max_rows, s_rounded)
    return max(sub, (ts // sub) * sub)


# ----------------------------------------------------------------------------
# Forward
# ----------------------------------------------------------------------------

def positional_encoding_forward(x: jnp.ndarray, pe: jnp.ndarray) -> jnp.ndarray:
    """x: (B, S, D), pe: (max_len, D) f32 with max_len >= S. Returns x + pe[:S]."""
    B, S, D = x.shape
    max_len, Dp = pe.shape
    assert Dp == D, "d_model mismatch between x and pe"
    assert S <= max_len, "sequence length exceeds positional-encoding table"

    itemsize = jnp.dtype(x.dtype).itemsize

    # ---- Fast path: tiny workload -> one grid step, full-array VMEM blocks.
    if B * S * D * itemsize <= _FAST_PATH_BYTES:
        pe_s = pe[:S]  # static slice; S*D f32, negligible vs. launch overhead
        return pl.pallas_call(
            _pe_add_full_kernel,
            out_shape=jax.ShapeDtypeStruct((B, S, D), x.dtype),
        )(x, pe_s)

    # ---- General path: tiled over (seq, batch), flattened to one grid axis.
    sub = _sublane_pack(itemsize)
    ts = _pick_seq_tile(S, D, itemsize, sub)
    seq_tiles = pl.cdiv(S, ts)

    # Single flattened grid axis: i -> (s = i // B  outer, b = i % B  inner).
    # The pe block index only depends on s, so it is constant across the inner
    # batch sweep and Pallas skips its re-DMA on revisits.  A single parallel
    # axis of extent seq_tiles*B also keeps both v7x TensorCores busy whenever
    # there is more than one step (no degenerate size-1 sharded axis).
    grid = (seq_tiles * B,)

    x_spec = pl.BlockSpec(
        (pl.Squeezed(), ts, D), lambda i: (i % B, i // B, 0)
    )
    # pe is passed whole (no per-call slice/cast); only rows addressed by the
    # seq-tile index are fetched.  Rows >= S (or >= max_len) in a partial last
    # tile are OOB-padded by Pallas and the matching output rows are dropped.
    pe_spec = pl.BlockSpec((ts, D), lambda i: (i // B, 0))
    out_spec = pl.BlockSpec(
        (pl.Squeezed(), ts, D), lambda i: (i % B, i // B, 0)
    )

    return pl.pallas_call(
        _pe_add_tile_kernel,
        out_shape=jax.ShapeDtypeStruct((B, S, D), x.dtype),
        grid=grid,
        in_specs=[x_spec, pe_spec],
        out_specs=out_spec,
        compiler_params=pltpu.CompilerParams(
            dimension_semantics=("parallel",),
            vmem_limit_bytes=_VMEM_LIMIT,
        ),
    )(x, pe)


if __name__ == "__main__":
    d_model, max_len = 768, 200
    pe = _build_pe(d_model, max_len)

    key = jax.random.PRNGKey(0)
    k1, k2 = jax.random.split(key)

    # --- Test 1: small f32 workload -> fast path (single full-block step).
    B, S = 2, 16
    x = jax.random.normal(k1, (B, S, d_model), dtype=jnp.float32)
    ref = x + pe[None, :S, :]
    out = jax.block_until_ready(positional_encoding_forward(x, pe))
    assert out.shape == (B, S, d_model)
    assert jnp.allclose(out, ref, atol=1e-6), "fast-path mismatch vs reference"

    # --- Test 2: full-length bf16 workload -> tiled path (flattened grid,
    #     pe fetched once, partial tile exercises OOB padding / masked stores).
    B2, S2 = 2, 200
    x2 = jax.random.normal(k2, (B2, S2, d_model), dtype=jnp.bfloat16)
    ref2 = (x2.astype(jnp.float32) + pe[None, :S2, :]).astype(jnp.bfloat16)
    out2 = jax.block_until_ready(positional_encoding_forward(x2, pe))
    assert out2.shape == (B2, S2, d_model)
    assert out2.dtype == jnp.bfloat16
    assert jnp.allclose(
        out2.astype(jnp.float32), ref2.astype(jnp.float32), atol=1e-2, rtol=1e-2
    ), "tiled-path mismatch vs reference"

    print("KERNEL_OK")
</pallas_src>

<mosaic_0001>
module attributes {stable_mosaic.version = 11 : i64} {
  func.func @_pe_add_full_kernel(%arg0: memref<2x16x768xf32, #tpu.memory_space<vmem>>, %arg1: memref<16x768xf32, #tpu.memory_space<vmem>>, %arg2: memref<2x16x768xf32, #tpu.memory_space<vmem>>) attributes {dimension_semantics = [], scalar_prefetch = 0 : i64, scratch_operands = 0 : i64, tpu.core_type = #tpu.core_type<tc>} {
    %c0 = arith.constant 0 : index
    %c0_0 = arith.constant 0 : index
    %c0_1 = arith.constant 0 : index
    %0 = vector.load %arg0[%c0, %c0_0, %c0_1] : memref<2x16x768xf32, #tpu.memory_space<vmem>>, vector<2x16x768xf32>
    %c0_2 = arith.constant 0 : index
    %c0_3 = arith.constant 0 : index
    %1 = vector.load %arg1[%c0_2, %c0_3] : memref<16x768xf32, #tpu.memory_space<vmem>>, vector<16x768xf32>
    %2 = vector.shape_cast %1 : vector<16x768xf32> to vector<1x16x768xf32>
    %3 = vector.broadcast %2 : vector<1x16x768xf32> to vector<2x16x768xf32>
    %4 = arith.addf %0, %3 : vector<2x16x768xf32>
    %c0_4 = arith.constant 0 : index
    %c0_5 = arith.constant 0 : index
    %c0_6 = arith.constant 0 : index
    %5 = vector.load %arg2[%c0_4, %c0_5, %c0_6] : memref<2x16x768xf32, #tpu.memory_space<vmem>>, vector<2x16x768xf32>
    tpu.vector_store %arg2[%c0_4, %c0_5, %c0_6], %4 {strides = array<i32>} : memref<2x16x768xf32, #tpu.memory_space<vmem>>, vector<2x16x768xf32>,
    return
  }
}

</mosaic_0001>

<bundles_post_ra>
// kernel: tpu_custom_call.1
= control target key start
LH: loop header
LB: loop body
LE: loop exit
PB: predicated region body
PF: predicated region fallthrough
CT: control target
= control target key end

     0   :  { %7 = vsyncpa [#allocation3], 0  ;;  %s284_s0 = inlined_call_operand.hbm [shape: f32[2,16,768], index: 0, kind: input, shape index: {}]   ;;  %s285_s1 = inlined_call_operand.hbm [shape: f32[16,768], index: 1, kind: input, shape index: {}]   ;;  %s286_s2 = inlined_call_operand.hbm [shape: f32[2,16,768], index: 2, kind: output, shape index: {}]  }
   0x1   :  { %8 = vsyncpa [#allocation6], 0 }
   0x2   :  { %9 = vsyncpa [#allocation4], 0  ;;  %s219_s9 = smov [#allocation2]   ;;  %s147_s13 = scalar_lea.hbm %s284_s0, 3072 }
   0x3   :  { %s15_s10 = sshll.u32 %s219_s9, 4  ;;  %p148_p0 = scmp.ne.s32.totalorder %s284_s0, %s147_s13  ;;  %s16_s10 = int_to_ptr.vmem [resolvable:$true] %s15_s10 }
   0x4   :  { %p151_p1 = scmp.lt.u32.totalorder %s147_s13, %s284_s0 }
   0x6   :  { %p153_p2 = pnand %p151_p1, %p148_p0 }
   0x8   :  { %156 = shalt.err (!%p153_p2)
}
   0x9   :  { %s157_s18 = scalar_lea.vmem %s16_s10, 3072  ;;  %p162_p4 = scmp.lt.s32.totalorder %s16_s10, %s16_s10 }
   0xa   :  { %p158_p3 = scmp.ne.s32.totalorder %s16_s10, %s157_s18  ;;  %p163_p5 = scmp.lt.s32.totalorder %s157_s18, %s157_s18 }
   0xc   :  { %p164_p6 = por %p163_p5, %p162_p4 }
   0xe   :  { %p165_p7 = pnand %p164_p6, %p158_p3 }
  0x10   :  { %168 = shalt.err (!%p165_p7)
}
  0x11   :  { %s220_s19 = smov 768   ;;  %s221_s20 = smov 48  }
  0x12   :  { %21 = dma.hbm_to_vmem [thread:$0]  %s284_s0, 3072, %s16_s10, [#allocation3], %s220_s19, %s220_s19, %s221_s20  }
  0x13   :  { %s222_s23 = smov [#allocation5]   ;;  %s169_s27 = scalar_lea.hbm %s285_s1, 1536 }
  0x14   :  { %s27_s24 = sshll.u32 %s222_s23, 4  ;;  %p170_p8 = scmp.ne.s32.totalorder %s285_s1, %s169_s27  ;;  %s28_s24 = int_to_ptr.vmem [resolvable:$true] %s27_s24 }
  0x15   :  { %p173_p9 = scmp.lt.u32.totalorder %s169_s27, %s285_s1 }
  0x17   :  { %p175_p10 = pnand %p173_p9, %p170_p8 }
  0x19   :  { %178 = shalt.err (!%p175_p10)
}
  0x1a   :  { %s179_s4 = scalar_lea.vmem %s28_s24, 1536  ;;  %p184_p12 = scmp.lt.s32.totalorder %s28_s24, %s28_s24 }
  0x1b   :  { %p180_p11 = scmp.ne.s32.totalorder %s28_s24, %s179_s4  ;;  %p185_p13 = scmp.lt.s32.totalorder %s179_s4, %s179_s4 }
  0x1d   :  { %p186_p0 = por %p185_p13, %p184_p12 }
  0x1f   :  { %p187_p1 = pnand %p186_p0, %p180_p11 }
  0x21   :  { %190 = shalt.err (!%p187_p1)
}
  0x22   :  { %33 = dma.hbm_to_vmem [thread:$0]  %s285_s1, 1536, %s28_s24, [#allocation6], %s220_s19, %s220_s19, %s221_s20  }
  0x23   :  { %213 = dma.done.wait [#allocation3], 3072  }
  0x24   :  { %214 = vsyncadd [#allocation3], 4294964224 }
  0x25   :  { %215 = dma.done.wait [#allocation6], 1536  }
  0x26   :  { %216 = vsyncadd [#allocation6], 4294965760  ;;  %v40_v0 = vld [vmem:[#allocation2] sm:$0xff]  ;;  %v41_v2 = vld [vmem:[#allocation2 + $0x8] sm:$0xff]  ;;  %s223_s1 = smov [#allocation7]  }
  0x27   :  { %v64_v1 = vld [vmem:[#allocation5] sm:$0xff]  ;;  %v65_v4 = vld [vmem:[#allocation5 + $0x8] sm:$0xff]  ;;  %v42_v5 = vld [vmem:[#allocation2 + $0x10] sm:$0xff]  ;;  %s129_s6 = sshll.u32 %s223_s1, 4  ;;  %s130_s6 = int_to_ptr.vmem [resolvable:$true] %s129_s6 }
  0x28   :  { %v76_v3 = vadd.f32 %v64_v1, %v40_v0  ;;  %v66_v6 = vld [vmem:[#allocation5 + $0x10] sm:$0xff]  ;;  %v77_v7 = vadd.f32 %v65_v4, %v41_v2  ;;  %v43_v9 = vld [vmem:[#allocation2 + $0x18] sm:$0xff]  ;;  %v44_v11 = vld [vmem:[#allocation2 + $0x20] sm:$0xff]  ;;  %s191_s7 = scalar_lea.vmem %s130_s6, 3072  ;;  %p196_p3 = scmp.lt.s32.totalorder %s130_s6, %s130_s6 }
  0x29   :  { %v78_v8 = vadd.f32 %v66_v6, %v42_v5  ;;  %v67_v10 = vld [vmem:[#allocation5 + $0x18] sm:$0xff]  ;;  %v68_v13 = vld [vmem:[#allocation5 + $0x20] sm:$0xff]  ;;  %v45_v14 = vld [vmem:[#allocation2 + $0x28] sm:$0xff]  ;;  %p192_p2 = scmp.ne.s32.totalorder %s130_s6, %s191_s7  ;;  %p197_p4 = scmp.lt.s32.totalorder %s191_s7, %s191_s7 }
  0x2a   :  { %100 = vst [vmem:[#allocation7] sm:$0xff] %v76_v3  ;;  %v79_v12 = vadd.f32 %v67_v10, %v43_v9  ;;  %v69_v15 = vld [vmem:[#allocation5 + $0x28] sm:$0xff]  ;;  %101 = vst [vmem:[#allocation7 + $0x8] sm:$0xff] %v77_v7  ;;  %v80_v16 = vadd.f32 %v68_v13, %v44_v11  ;;  %v46_v18 = vld [vmem:[#allocation2 + $0x30] sm:$0xff] }
  0x2b   :  { %102 = vst [vmem:[#allocation7 + $0x10] sm:$0xff] %v78_v8  ;;  %v81_v17 = vadd.f32 %v69_v15, %v45_v14  ;;  %v70_v19 = vld [vmem:[#allocation5 + $0x30] sm:$0xff]  ;;  %v47_v20 = vld [vmem:[#allocation2 + $0x38] sm:$0xff]  ;;  %v48_v23 = vld [vmem:[#allocation2 + $0x40] sm:$0xff]  ;;  %p198_p5 = por %p197_p4, %p196_p3 }
  0x2c   :  { %103 = vst [vmem:[#allocation7 + $0x18] sm:$0xff] %v79_v12  ;;  %v82_v21 = vadd.f32 %v70_v19, %v46_v18  ;;  %v71_v22 = vld [vmem:[#allocation5 + $0x38] sm:$0xff]  ;;  %v72_v24 = vld [vmem:[#allocation5 + $0x40] sm:$0xff]  ;;  %104 = vst [vmem:[#allocation7 + $0x20] sm:$0xff] %v80_v16 }
  0x2d   :  { %105 = vst [vmem:[#allocation7 + $0x28] sm:$0xff] %v81_v17  ;;  %v83_v25 = vadd.f32 %v71_v22, %v47_v20  ;;  %v84_v26 = vadd.f32 %v72_v24, %v48_v23  ;;  %v49_v27 = vld [vmem:[#allocation2 + $0x48] sm:$0xff]  ;;  %v50_v29 = vld [vmem:[#allocation2 + $0x50] sm:$0xff]  ;;  %v51_v32 = vld [vmem:[#allocation2 + $0x58] sm:$0xff]  ;;  %p199_p6 = pnand %p198_p5, %p192_p2 }
  0x2e   :  { %v73_v28 = vld [vmem:[#allocation5 + $0x48] sm:$0xff]  ;;  %106 = vst [vmem:[#allocation7 + $0x30] sm:$0xff] %v82_v21  ;;  %v74_v31 = vld [vmem:[#allocation5 + $0x50] sm:$0xff]  ;;  %v75_v33 = vld [vmem:[#allocation5 + $0x58] sm:$0xff] }
  0x2f   :  { %v85_v30 = vadd.f32 %v73_v28, %v49_v27  ;;  %107 = vst [vmem:[#allocation7 + $0x38] sm:$0xff] %v83_v25  ;;  %108 = vst [vmem:[#allocation7 + $0x40] sm:$0xff] %v84_v26  ;;  %v86_v34 = vadd.f32 %v74_v31, %v50_v29  ;;  %v87_v35 = vadd.f32 %v75_v33, %v51_v32  ;;  %v52_v36 = vld [vmem:[#allocation2 + $0x60] sm:$0xff]  ;;  %v53_v37 = vld [vmem:[#allocation2 + $0x68] sm:$0xff] }
  0x30   :  { %v54_v38 = vld [vmem:[#allocation2 + $0x70] sm:$0xff]  ;;  %v88_v39 = vadd.f32 %v64_v1, %v52_v36  ;;  %v89_v40 = vadd.f32 %v65_v4, %v53_v37  ;;  %v55_v42 = vld [vmem:[#allocation2 + $0x78] sm:$0xff]  ;;  %v56_v43 = vld [vmem:[#allocation2 + $0x80] sm:$0xff] }
  0x31   :  { %109 = vst [vmem:[#allocation7 + $0x48] sm:$0xff] %v85_v30  ;;  %v90_v41 = vadd.f32 %v66_v6, %v54_v38  ;;  %v57_v44 = vld [vmem:[#allocation2 + $0x88] sm:$0xff]  ;;  %110 = vst [vmem:[#allocation7 + $0x50] sm:$0xff] %v86_v34  ;;  %v91_v45 = vadd.f32 %v67_v10, %v55_v42  ;;  %v92_v46 = vadd.f32 %v68_v13, %v56_v43  ;;  %v58_v48 = vld [vmem:[#allocation2 + $0x90] sm:$0xff] }
  0x32   :  { %111 = vst [vmem:[#allocation7 + $0x58] sm:$0xff] %v87_v35  ;;  %v93_v47 = vadd.f32 %v69_v15, %v57_v44  ;;  %v59_v49 = vld [vmem:[#allocation2 + $0x98] sm:$0xff]  ;;  %v60_v50 = vld [vmem:[#allocation2 + $0xa0] sm:$0xff]  ;;  %112 = vst [vmem:[#allocation7 + $0x60] sm:$0xff] %v88_v39  ;;  %v94_v51 = vadd.f32 %v70_v19, %v58_v48 }
  0x33   :  { %113 = vst [vmem:[#allocation7 + $0x68] sm:$0xff] %v89_v40  ;;  %114 = vst [vmem:[#allocation7 + $0x70] sm:$0xff] %v90_v41  ;;  %v95_v52 = vadd.f32 %v71_v22, %v59_v49  ;;  %v96_v53 = vadd.f32 %v72_v24, %v60_v50  ;;  %v61_v54 = vld [vmem:[#allocation2 + $0xa8] sm:$0xff]  ;;  %v62_v55 = vld [vmem:[#allocation2 + $0xb0] sm:$0xff] }
  0x34   :  { %v63_v56 = vld [vmem:[#allocation2 + $0xb8] sm:$0xff]  ;;  %115 = vst [vmem:[#allocation7 + $0x78] sm:$0xff] %v91_v45  ;;  %116 = vst [vmem:[#allocation7 + $0x80] sm:$0xff] %v92_v46  ;;  %v97_v57 = vadd.f32 %v73_v28, %v61_v54  ;;  %v98_v58 = vadd.f32 %v74_v31, %v62_v55 }
  0x35   :  { %117 = vst [vmem:[#allocation7 + $0x88] sm:$0xff] %v93_v47  ;;  %v99_v59 = vadd.f32 %v75_v33, %v63_v56  ;;  %118 = vst [vmem:[#allocation7 + $0x90] sm:$0xff] %v94_v51 }
  0x36   :  { %119 = vst [vmem:[#allocation7 + $0x98] sm:$0xff] %v95_v52  ;;  %120 = vst [vmem:[#allocation7 + $0xa0] sm:$0xff] %v96_v53 }
  0x37   :  { %121 = vst [vmem:[#allocation7 + $0xa8] sm:$0xff] %v97_v57  ;;  %122 = vst [vmem:[#allocation7 + $0xb0] sm:$0xff] %v98_v58 }
  0x38   :  { %123 = vst [vmem:[#allocation7 + $0xb8] sm:$0xff] %v99_v59 }
  0x39   :  { %202 = shalt.err (!%p199_p6)
}
  0x3a   :  { %s203_s10 = scalar_lea.hbm %s286_s2, 3072 }
  0x3b   :  { %p204_p7 = scmp.ne.s32.totalorder %s286_s2, %s203_s10  ;;  %p207_p8 = scmp.lt.u32.totalorder %s203_s10, %s286_s2 }
  0x3d   :  { %p209_p9 = pnand %p207_p8, %p204_p7 }
  0x3f   :  { %212 = shalt.err (!%p209_p9)
}
  0x40   :  { %135 = dma.vmem_to_hbm [thread:$0]  %s130_s6, 3072, %s286_s2, [#allocation4], %s220_s19, %s220_s19, %s221_s20  }
  0x41   :  { %217 = dma.done.wait [#allocation4], 3072  }
  0x42   :  { %218 = vsyncadd [#allocation4], 4294964224 }
  0x43   :  { %139 = vsyncpa [#allocation3], 1 }
  0x44   :  { %140 = vsyncpa [#allocation6], 1 }
  0x45   :  { %141 = vsyncpa [#allocation4], 1 }

</bundles_post_ra>
